<compile_context>
chip_gen: v7x
topology: tpu7x:2x2x1
jax: 0.10.0
libtpu: 0.0.40
codegen_flags: <defaults>
</compile_context>

<pallas_src>
import functools
import math

import jax
import jax.numpy as jnp
from jax import lax
from jax.experimental import pallas as pl
from jax.experimental.pallas import tpu as pltpu

LANE = 128       # TPU lane width; all feature axes are zero-padded to this (lane-dense stores).
NEG_INF = -1e30  # additive pad-lane mask folded into the head bias


# ---------------------------------------------------------------------------
# Fused Pallas kernel: all conv layers + ReLU + LayerNorm + pool + head + log_softmax
# ---------------------------------------------------------------------------

def fused_gnn_kernel(a_ref, x_ref, w_ref, b_ref, g_ref, be_ref,
                     p_ref, wh_ref, bh_ref,
                     emb_ref, logits_ref, logprobs_ref,
                     h_scr,
                     *, num_conv_layers, hidden_dim, eps):
    inv_h = jnp.float32(1.0 / hidden_dim)
    h_scr[...] = x_ref[...]                  # lane-padded input features (f32), resident in VMEM

    # Hoisted once (JAX does not CSE broadcast_in_dim): mask of the real hidden lanes.
    lane_id = lax.broadcasted_iota(jnp.int32, (1, LANE), 1)
    feat_mask = (lane_id < hidden_dim).astype(jnp.float32)

    def conv_relu_ln(l, write_emb):
        # bf16 operands on both MXU dots, f32 accumulation.
        h_bf = h_scr[...].astype(jnp.bfloat16)
        xw = jnp.dot(h_bf, w_ref[l], preferred_element_type=jnp.float32)
        conv = jnp.dot(a_ref[...], xw.astype(jnp.bfloat16),
                       preferred_element_type=jnp.float32) + b_ref[l:l + 1, :]
        if write_emb:                        # only the last conv output is consumed as `emb`
            emb_ref[...] = conv
        r = jnp.maximum(conv, 0.0)
        # Two-pass LayerNorm over the real `hidden_dim` lanes.  Padded lanes of `r` are
        # exactly zero, so sum(r) over the full vreg equals the sum over real features;
        # the centered term is masked so padded lanes don't pollute the variance.
        mean = jnp.sum(r, axis=-1, keepdims=True) * inv_h
        centered = (r - mean) * feat_mask
        var = jnp.sum(centered * centered, axis=-1, keepdims=True) * inv_h
        normed = centered * lax.rsqrt(var + eps)
        # gamma/beta are zero-padded -> padded lanes stay exactly zero for the next layer.
        h_scr[...] = normed * g_ref[l:l + 1, :] + be_ref[l:l + 1, :]

    # Layer loop, fully unrolled (static small depth).  Intermediate `emb` stores are dead
    # in the original module -> skipped entirely.
    for l in range(num_conv_layers - 1):
        conv_relu_ln(l, write_emb=False)
    conv_relu_ln(num_conv_layers - 1, write_emb=True)

    # global_mean_pool + collapsed (activation-free) 3-layer MLP + log_softmax.
    h_bf = h_scr[...].astype(jnp.bfloat16)
    pooled = jnp.dot(p_ref[...], h_bf, preferred_element_type=jnp.float32)   # [B, LANE]
    # bh_ref already carries -1e30 in pad lanes -> no iota/where needed before softmax.
    logits = jnp.dot(pooled, wh_ref[...], preferred_element_type=jnp.float32) + bh_ref[...]
    logits_ref[...] = logits

    m = jnp.max(logits, axis=-1, keepdims=True)
    s = logits - m
    lse = jnp.log(jnp.sum(jnp.exp(s), axis=-1, keepdims=True))
    logprobs_ref[...] = s - lse


def fused_forward(a_bf, x_pad, w_stk, b_stk, g_stk, be_stk, p_bf, wh_pad, bh_pad,
                  *, num_conv_layers, hidden_dim):
    n = x_pad.shape[0]
    bsz = p_bf.shape[0]

    operands = (a_bf, x_pad, w_stk, b_stk, g_stk, be_stk, p_bf, wh_pad, bh_pad)
    in_bytes = sum(math.prod(o.shape) * o.dtype.itemsize for o in operands)
    out_bytes = (n * LANE + 2 * bsz * LANE) * 4          # emb + logits + logprobs (f32)
    scratch_bytes = n * LANE * 4                          # resident activation h
    resident = in_bytes + out_bytes + scratch_bytes
    # Size the scoped VMEM budget to the actual resident set (+ headroom), clamped to a
    # value that is safe on every generation (v7x only has 64 MiB physical per TC).
    vmem_limit = int(min(max(2 * resident + (4 << 20), 16 << 20), 48 << 20))

    flops = (num_conv_layers * (2 * n * LANE * LANE + 2 * n * n * LANE)
             + 2 * bsz * n * LANE + 2 * bsz * LANE * LANE)
    transcendentals = num_conv_layers * n + bsz * (LANE + 1)
    cost = pl.CostEstimate(flops=flops, transcendentals=transcendentals,
                           bytes_accessed=in_bytes + out_bytes)

    kernel = functools.partial(
        fused_gnn_kernel,
        num_conv_layers=num_conv_layers, hidden_dim=hidden_dim,
        eps=1e-5)                            # PyTorch LayerNorm eps default
    vmem = lambda: pl.BlockSpec(memory_space=pltpu.MemorySpace.VMEM)
    return pl.pallas_call(
        kernel,
        out_shape=(jax.ShapeDtypeStruct((n, LANE), jnp.float32),     # emb (lane-padded)
                   jax.ShapeDtypeStruct((bsz, LANE), jnp.float32),   # logits (lane-padded)
                   jax.ShapeDtypeStruct((bsz, LANE), jnp.float32)),  # log_probs (lane-padded)
        in_specs=[vmem() for _ in range(9)],
        out_specs=(vmem(), vmem(), vmem()),
        scratch_shapes=[pltpu.VMEM((n, LANE), jnp.float32)],         # resident activation h
        compiler_params=pltpu.CompilerParams(vmem_limit_bytes=vmem_limit),
        cost_estimate=cost,
    )(*operands)


# ---------------------------------------------------------------------------
# Plain-JAX glue: adjacency normalization, pooling matrix, parameter packing
# ---------------------------------------------------------------------------

def _pad2(a, rows, cols):
    out = jnp.zeros((rows, cols), a.dtype)
    return out.at[: a.shape[0], : a.shape[1]].set(a)


def _pad_row(v, cols):
    v = v.reshape(-1)
    out = jnp.zeros((cols,), v.dtype)
    return out.at[: v.shape[0]].set(v)


def gcn_norm_dense(edge_index, num_nodes):
    """Dense D^{-1/2}(A+I)D^{-1/2}, row = target (dst), col = source (src)."""
    src, dst = edge_index[0], edge_index[1]
    a = jnp.zeros((num_nodes, num_nodes), jnp.float32).at[dst, src].add(1.0)
    eye = jnp.eye(num_nodes, dtype=bool)
    # add a unit self-loop only where one is missing (PyG add_remaining_self_loops)
    a = jnp.where(eye, jnp.maximum(a, 1.0), a)
    deg = jnp.sum(a, axis=1)
    dinv = jnp.where(deg > 0, 1.0 / jnp.sqrt(deg), 0.0)
    return dinv[:, None] * a * dinv[None, :]


def mean_pool_matrix(batch, num_graphs):
    """P[b, n] = 1/|graph b| if batch[n] == b else 0."""
    onehot = (batch[None, :] == jnp.arange(num_graphs)[:, None]).astype(jnp.float32)
    counts = jnp.maximum(jnp.sum(onehot, axis=1, keepdims=True), 1.0)
    return onehot / counts


def init_params(key, input_dim, hidden_dim, dense_hidden_dim, output_dim,
                num_layers, heads=1):
    # Only the module's default GCNConv / heads=1 path is implemented.
    assert heads == 1, "only heads=1 (GCNConv path) is supported"
    h = hidden_dim * heads
    keys = jax.random.split(key, num_layers + 4)
    ki = iter(range(len(keys)))

    def lin(k_w, fan_in, fan_out):
        w = jax.random.normal(k_w, (fan_in, fan_out), jnp.float32) * 0.1
        b = jnp.zeros((1, fan_out), jnp.float32)
        return w, b

    params = {"conv_w": [], "conv_b": [], "ln_g": [], "ln_b": []}

    # conv1 + norm1
    w, b = lin(keys[next(ki)], input_dim, hidden_dim)
    params["conv_w"].append(w); params["conv_b"].append(b)
    params["ln_g"].append(jnp.ones((1, h), jnp.float32))
    params["ln_b"].append(jnp.zeros((1, h), jnp.float32))

    # convs / lns
    for _ in range(num_layers):
        w, b = lin(keys[next(ki)], h, hidden_dim)
        params["conv_w"].append(w); params["conv_b"].append(b)
        params["ln_g"].append(jnp.ones((1, h), jnp.float32))
        params["ln_b"].append(jnp.zeros((1, h), jnp.float32))

    # post_mp: Linear(h, dense) -> Linear(dense, dense//2) -> Linear(dense//2, out)
    params["mlp_w1"], params["mlp_b1"] = lin(keys[next(ki)], h, dense_hidden_dim)
    params["mlp_w2"], params["mlp_b2"] = lin(keys[next(ki)], dense_hidden_dim,
                                             dense_hidden_dim // 2)
    params["mlp_w3"], params["mlp_b3"] = lin(keys[next(ki)], dense_hidden_dim // 2,
                                             output_dim)
    return params


def gnn_forward(params, x, a_hat, pool_mat, *, num_layers, hidden_dim, output_dim):
    # TODO(synk): F.dropout is skipped (module evaluated with training=False -> identity).
    n, input_dim = x.shape
    num_conv_layers = num_layers + 1

    # The 128-lane padding scheme only supports feature widths up to one vreg lane row.
    assert input_dim <= LANE and hidden_dim <= LANE and output_dim <= LANE, \
        "input/hidden/output dims must be <= 128 for the lane-padded fused kernel"

    # Lane-pad activations / per-layer params and stack layers.  Conv weights become
    # [L, 128, 128] bf16 (MXU-native feed); bias/gamma/beta are flat [L, 128] f32 rows.
    x_pad = _pad2(x, n, LANE)
    w_stk = jnp.stack([_pad2(w, LANE, LANE) for w in params["conv_w"]]).astype(jnp.bfloat16)
    b_stk = jnp.stack([_pad_row(b, LANE) for b in params["conv_b"]])
    g_stk = jnp.stack([_pad_row(g, LANE) for g in params["ln_g"]])
    be_stk = jnp.stack([_pad_row(b, LANE) for b in params["ln_b"]])

    # post_mp is Linear->Linear->Linear with no activations: collapse exactly to one affine
    # map.  Fold the pad-lane log_softmax mask (-1e30) into the head bias.
    w_head = params["mlp_w1"] @ params["mlp_w2"] @ params["mlp_w3"]
    b_head = (params["mlp_b1"] @ params["mlp_w2"] + params["mlp_b2"]) @ params["mlp_w3"] \
             + params["mlp_b3"]
    wh_pad = _pad2(w_head, LANE, LANE)
    bh_row = _pad_row(b_head, LANE)
    bh_pad = jnp.where(jnp.arange(LANE) < output_dim, bh_row,
                       jnp.float32(NEG_INF)).reshape(1, LANE)

    # bf16 MXU feeds for adjacency and pooling matrix; accumulation stays f32 in-kernel.
    a_bf = a_hat.astype(jnp.bfloat16)
    p_bf = pool_mat.astype(jnp.bfloat16)

    emb_pad, logits_pad, logprobs_pad = fused_forward(
        a_bf, x_pad, w_stk, b_stk, g_stk, be_stk, p_bf, wh_pad, bh_pad,
        num_conv_layers=num_conv_layers, hidden_dim=hidden_dim)

    return (emb_pad[:, :hidden_dim],
            logits_pad[:, :output_dim],
            logprobs_pad[:, :output_dim])


def gnn_reference(params, x, a_hat, pool_mat, num_layers):
    """Pure-JAX f32 reference of the module forward (for a loose correctness check)."""
    h, emb = x, None
    for l in range(num_layers + 1):
        conv = a_hat @ (h @ params["conv_w"][l]) + params["conv_b"][l]
        emb = conv
        r = jnp.maximum(conv, 0.0)
        mean = jnp.mean(r, axis=-1, keepdims=True)
        var = jnp.mean((r - mean) ** 2, axis=-1, keepdims=True)
        h = (r - mean) * lax.rsqrt(var + 1e-5) * params["ln_g"][l] + params["ln_b"][l]
    pooled = pool_mat @ h
    h1 = pooled @ params["mlp_w1"] + params["mlp_b1"]
    h2 = h1 @ params["mlp_w2"] + params["mlp_b2"]
    logits = h2 @ params["mlp_w3"] + params["mlp_b3"]
    return emb, logits, jax.nn.log_softmax(logits, axis=-1)


# ---------------------------------------------------------------------------
# Main
# ---------------------------------------------------------------------------

if __name__ == "__main__":
    NUM_NODES = 16
    INPUT_DIM = 8
    HIDDEN_DIM = 32
    DENSE_HIDDEN_DIM = 32
    OUTPUT_DIM = 4
    NUM_LAYERS = 2
    HEADS = 1
    NUM_GRAPHS = 2

    key = jax.random.PRNGKey(0)
    k_x, k_p = jax.random.split(key)

    # Node features [N, F_in]
    x = jax.random.normal(k_x, (NUM_NODES, INPUT_DIM), jnp.float32)

    # Two 8-node ring graphs (bidirectional edges), batch assignment 0/1.
    src_list, dst_list = [], []
    for g in range(NUM_GRAPHS):
        base = g * (NUM_NODES // NUM_GRAPHS)
        n_g = NUM_NODES // NUM_GRAPHS
        for i in range(n_g):
            a_node = base + i
            b_node = base + (i + 1) % n_g
            src_list += [a_node, b_node]
            dst_list += [b_node, a_node]
    edge_index = jnp.array([src_list, dst_list], dtype=jnp.int32)
    batch = jnp.repeat(jnp.arange(NUM_GRAPHS, dtype=jnp.int32),
                       NUM_NODES // NUM_GRAPHS)

    a_hat = gcn_norm_dense(edge_index, NUM_NODES)       # [N, N]
    pool_mat = mean_pool_matrix(batch, NUM_GRAPHS)      # [B, N]

    params = init_params(k_p, INPUT_DIM, HIDDEN_DIM, DENSE_HIDDEN_DIM,
                         OUTPUT_DIM, NUM_LAYERS, HEADS)

    fwd = jax.jit(functools.partial(gnn_forward,
                                    num_layers=NUM_LAYERS,
                                    hidden_dim=HIDDEN_DIM * HEADS,
                                    output_dim=OUTPUT_DIM))
    emb, logits, logprobs = fwd(params, x, a_hat, pool_mat)
    jax.block_until_ready((emb, logits, logprobs))

    assert emb.shape == (NUM_NODES, HIDDEN_DIM * HEADS)
    assert logits.shape == (NUM_GRAPHS, OUTPUT_DIM)
    assert logprobs.shape == (NUM_GRAPHS, OUTPUT_DIM)
    # log_softmax rows must (approximately) exponentiate-sum to 1.
    assert jnp.allclose(jnp.sum(jnp.exp(logprobs), axis=1), 1.0, atol=1e-5)

    # Loose check against the pure-f32 reference (tolerance covers the intentional
    # bf16 operand feeds to the MXU).
    emb_r, logits_r, logprobs_r = gnn_reference(params, x, a_hat, pool_mat, NUM_LAYERS)
    assert jnp.allclose(emb, emb_r, atol=5e-2, rtol=5e-2)
    assert jnp.allclose(logits, logits_r, atol=5e-2, rtol=5e-2)
    assert jnp.allclose(logprobs, logprobs_r, atol=5e-2, rtol=5e-2)

    print("KERNEL_OK")
</pallas_src>

<mosaic_0001>
module attributes {stable_mosaic.version = 11 : i64} {
  func.func @fused_gnn_kernel(%arg0: memref<16x16xbf16, #tpu.memory_space<vmem>>, %arg1: memref<16x128xf32, #tpu.memory_space<vmem>>, %arg2: memref<3x128x128xbf16, #tpu.memory_space<vmem>>, %arg3: memref<3x128xf32, #tpu.memory_space<vmem>>, %arg4: memref<3x128xf32, #tpu.memory_space<vmem>>, %arg5: memref<3x128xf32, #tpu.memory_space<vmem>>, %arg6: memref<2x16xbf16, #tpu.memory_space<vmem>>, %arg7: memref<128x128xf32, #tpu.memory_space<vmem>>, %arg8: memref<1x128xf32, #tpu.memory_space<vmem>>, %arg9: memref<16x128xf32, #tpu.memory_space<vmem>>, %arg10: memref<2x128xf32, #tpu.memory_space<vmem>>, %arg11: memref<2x128xf32, #tpu.memory_space<vmem>>, %arg12: memref<16x128xf32, #tpu.memory_space<vmem>>) attributes {dimension_semantics = [], scalar_prefetch = 0 : i64, scratch_operands = 1 : i64, tpu.core_type = #tpu.core_type<tc>} {
    %c0 = arith.constant 0 : index
    %c0_0 = arith.constant 0 : index
    %0 = vector.load %arg1[%c0, %c0_0] : memref<16x128xf32, #tpu.memory_space<vmem>>, vector<16x128xf32>
    %c0_1 = arith.constant 0 : index
    %c0_2 = arith.constant 0 : index
    %1 = vector.load %arg12[%c0_1, %c0_2] : memref<16x128xf32, #tpu.memory_space<vmem>>, vector<16x128xf32>
    tpu.vector_store %arg12[%c0_1, %c0_2], %0 {strides = array<i32>} : memref<16x128xf32, #tpu.memory_space<vmem>>, vector<16x128xf32>,
    %2 = tpu.iota {dimensions = array<i32: 1>} : vector<1x128xi32>
    %c32_i32 = arith.constant 32 : i32
    %3 = vector.broadcast %c32_i32 : i32 to vector<1x128xi32>
    %4 = arith.cmpi slt, %2, %3 : vector<1x128xi32>
    %5 = arith.extui %4 : vector<1x128xi1> to vector<1x128xi32>
    %6 = arith.sitofp %5 : vector<1x128xi32> to vector<1x128xf32>
    %c0_3 = arith.constant 0 : index
    %c0_4 = arith.constant 0 : index
    %7 = vector.load %arg12[%c0_3, %c0_4] : memref<16x128xf32, #tpu.memory_space<vmem>>, vector<16x128xf32>
    %8 = arith.truncf %7 : vector<16x128xf32> to vector<16x128xbf16>
    %c0_5 = arith.constant 0 : index
    %c0_6 = arith.constant 0 : index
    %c0_7 = arith.constant 0 : index
    %9 = vector.load %arg2[%c0_5, %c0_6, %c0_7] : memref<3x128x128xbf16, #tpu.memory_space<vmem>>, vector<1x128x128xbf16>
    %10 = vector.shape_cast %9 : vector<1x128x128xbf16> to vector<128x128xbf16>
    %cst = arith.constant dense<0.000000e+00> : vector<16x128xf32>
    %11 = tpu.matmul %8, %10, %cst {dimension_numbers = #tpu.dot_dimension_numbers<[1], [0], [0], [1], [0, 0, 1, 1], [], []>} : vector<16x128xbf16>, vector<128x128xbf16>, vector<16x128xf32> -> vector<16x128xf32>
    %c0_8 = arith.constant 0 : index
    %c0_9 = arith.constant 0 : index
    %12 = vector.load %arg0[%c0_8, %c0_9] : memref<16x16xbf16, #tpu.memory_space<vmem>>, vector<16x16xbf16>
    %13 = arith.truncf %11 : vector<16x128xf32> to vector<16x128xbf16>
    %cst_10 = arith.constant dense<0.000000e+00> : vector<16x128xf32>
    %14 = tpu.matmul %12, %13, %cst_10 {dimension_numbers = #tpu.dot_dimension_numbers<[1], [0], [0], [1], [0, 0, 1, 1], [], []>} : vector<16x16xbf16>, vector<16x128xbf16>, vector<16x128xf32> -> vector<16x128xf32>
    %c0_11 = arith.constant 0 : index
    %c0_12 = arith.constant 0 : index
    %15 = vector.load %arg3[%c0_11, %c0_12] : memref<3x128xf32, #tpu.memory_space<vmem>>, vector<1x128xf32>
    %16 = vector.broadcast %15 : vector<1x128xf32> to vector<16x128xf32>
    %17 = arith.addf %14, %16 : vector<16x128xf32>
    %cst_13 = arith.constant 0.000000e+00 : f32
    %18 = vector.broadcast %cst_13 : f32 to vector<16x128xf32>
    %19 = arith.maximumf %17, %18 : vector<16x128xf32>
    %cst_14 = arith.constant dense<0.000000e+00> : vector<16xf32>
    %20 = vector.multi_reduction <add>, %19, %cst_14 [1] : vector<16x128xf32> to vector<16xf32>
    %21 = vector.shape_cast %20 : vector<16xf32> to vector<16x1xf32>
    %cst_15 = arith.constant 3.125000e-02 : f32
    %22 = vector.broadcast %cst_15 : f32 to vector<16x1xf32>
    %23 = arith.mulf %21, %22 : vector<16x1xf32>
    %24 = vector.broadcast %23 : vector<16x1xf32> to vector<16x128xf32>
    %25 = arith.subf %19, %24 : vector<16x128xf32>
    %26 = vector.broadcast %6 : vector<1x128xf32> to vector<16x128xf32>
    %27 = arith.mulf %25, %26 : vector<16x128xf32>
    %28 = arith.mulf %27, %27 : vector<16x128xf32>
    %cst_16 = arith.constant dense<0.000000e+00> : vector<16xf32>
    %29 = vector.multi_reduction <add>, %28, %cst_16 [1] : vector<16x128xf32> to vector<16xf32>
    %30 = vector.shape_cast %29 : vector<16xf32> to vector<16x1xf32>
    %cst_17 = arith.constant 3.125000e-02 : f32
    %31 = vector.broadcast %cst_17 : f32 to vector<16x1xf32>
    %32 = arith.mulf %30, %31 : vector<16x1xf32>
    %cst_18 = arith.constant 9.99999974E-6 : f32
    %33 = vector.broadcast %cst_18 : f32 to vector<16x1xf32>
    %34 = arith.addf %32, %33 : vector<16x1xf32>
    %35 = math.rsqrt %34 : vector<16x1xf32>
    %36 = vector.broadcast %35 : vector<16x1xf32> to vector<16x128xf32>
    %37 = arith.mulf %27, %36 : vector<16x128xf32>
    %c0_19 = arith.constant 0 : index
    %c0_20 = arith.constant 0 : index
    %38 = vector.load %arg4[%c0_19, %c0_20] : memref<3x128xf32, #tpu.memory_space<vmem>>, vector<1x128xf32>
    %39 = vector.broadcast %38 : vector<1x128xf32> to vector<16x128xf32>
    %40 = arith.mulf %37, %39 : vector<16x128xf32>
    %c0_21 = arith.constant 0 : index
    %c0_22 = arith.constant 0 : index
    %41 = vector.load %arg5[%c0_21, %c0_22] : memref<3x128xf32, #tpu.memory_space<vmem>>, vector<1x128xf32>
    %42 = vector.broadcast %41 : vector<1x128xf32> to vector<16x128xf32>
    %43 = arith.addf %40, %42 : vector<16x128xf32>
    %c0_23 = arith.constant 0 : index
    %c0_24 = arith.constant 0 : index
    %44 = vector.load %arg12[%c0_23, %c0_24] : memref<16x128xf32, #tpu.memory_space<vmem>>, vector<16x128xf32>
    tpu.vector_store %arg12[%c0_23, %c0_24], %43 {strides = array<i32>} : memref<16x128xf32, #tpu.memory_space<vmem>>, vector<16x128xf32>,
    %c0_25 = arith.constant 0 : index
    %c0_26 = arith.constant 0 : index
    %45 = vector.load %arg12[%c0_25, %c0_26] : memref<16x128xf32, #tpu.memory_space<vmem>>, vector<16x128xf32>
    %46 = arith.truncf %45 : vector<16x128xf32> to vector<16x128xbf16>
    %c1 = arith.constant 1 : index
    %c0_27 = arith.constant 0 : index
    %c0_28 = arith.constant 0 : index
    %47 = vector.load %arg2[%c1, %c0_27, %c0_28] : memref<3x128x128xbf16, #tpu.memory_space<vmem>>, vector<1x128x128xbf16>
    %48 = vector.shape_cast %47 : vector<1x128x128xbf16> to vector<128x128xbf16>
    %cst_29 = arith.constant dense<0.000000e+00> : vector<16x128xf32>
    %49 = tpu.matmul %46, %48, %cst_29 {dimension_numbers = #tpu.dot_dimension_numbers<[1], [0], [0], [1], [0, 0, 1, 1], [], []>} : vector<16x128xbf16>, vector<128x128xbf16>, vector<16x128xf32> -> vector<16x128xf32>
    %c0_30 = arith.constant 0 : index
    %c0_31 = arith.constant 0 : index
    %50 = vector.load %arg0[%c0_30, %c0_31] : memref<16x16xbf16, #tpu.memory_space<vmem>>, vector<16x16xbf16>
    %51 = arith.truncf %49 : vector<16x128xf32> to vector<16x128xbf16>
    %cst_32 = arith.constant dense<0.000000e+00> : vector<16x128xf32>
    %52 = tpu.matmul %50, %51, %cst_32 {dimension_numbers = #tpu.dot_dimension_numbers<[1], [0], [0], [1], [0, 0, 1, 1], [], []>} : vector<16x16xbf16>, vector<16x128xbf16>, vector<16x128xf32> -> vector<16x128xf32>
    %c1_33 = arith.constant 1 : index
    %c0_34 = arith.constant 0 : index
    %53 = vector.load %arg3[%c1_33, %c0_34] : memref<3x128xf32, #tpu.memory_space<vmem>>, vector<1x128xf32>
    %54 = vector.broadcast %53 : vector<1x128xf32> to vector<16x128xf32>
    %55 = arith.addf %52, %54 : vector<16x128xf32>
    %cst_35 = arith.constant 0.000000e+00 : f32
    %56 = vector.broadcast %cst_35 : f32 to vector<16x128xf32>
    %57 = arith.maximumf %55, %56 : vector<16x128xf32>
    %cst_36 = arith.constant dense<0.000000e+00> : vector<16xf32>
    %58 = vector.multi_reduction <add>, %57, %cst_36 [1] : vector<16x128xf32> to vector<16xf32>
    %59 = vector.shape_cast %58 : vector<16xf32> to vector<16x1xf32>
    %cst_37 = arith.constant 3.125000e-02 : f32
    %60 = vector.broadcast %cst_37 : f32 to vector<16x1xf32>
    %61 = arith.mulf %59, %60 : vector<16x1xf32>
    %62 = vector.broadcast %61 : vector<16x1xf32> to vector<16x128xf32>
    %63 = arith.subf %57, %62 : vector<16x128xf32>
    %64 = vector.broadcast %6 : vector<1x128xf32> to vector<16x128xf32>
    %65 = arith.mulf %63, %64 : vector<16x128xf32>
    %66 = arith.mulf %65, %65 : vector<16x128xf32>
    %cst_38 = arith.constant dense<0.000000e+00> : vector<16xf32>
    %67 = vector.multi_reduction <add>, %66, %cst_38 [1] : vector<16x128xf32> to vector<16xf32>
    %68 = vector.shape_cast %67 : vector<16xf32> to vector<16x1xf32>
    %cst_39 = arith.constant 3.125000e-02 : f32
    %69 = vector.broadcast %cst_39 : f32 to vector<16x1xf32>
    %70 = arith.mulf %68, %69 : vector<16x1xf32>
    %cst_40 = arith.constant 9.99999974E-6 : f32
    %71 = vector.broadcast %cst_40 : f32 to vector<16x1xf32>
    %72 = arith.addf %70, %71 : vector<16x1xf32>
    %73 = math.rsqrt %72 : vector<16x1xf32>
    %74 = vector.broadcast %73 : vector<16x1xf32> to vector<16x128xf32>
    %75 = arith.mulf %65, %74 : vector<16x128xf32>
    %c1_41 = arith.constant 1 : index
    %c0_42 = arith.constant 0 : index
    %76 = vector.load %arg4[%c1_41, %c0_42] : memref<3x128xf32, #tpu.memory_space<vmem>>, vector<1x128xf32>
    %77 = vector.broadcast %76 : vector<1x128xf32> to vector<16x128xf32>
    %78 = arith.mulf %75, %77 : vector<16x128xf32>
    %c1_43 = arith.constant 1 : index
    %c0_44 = arith.constant 0 : index
    %79 = vector.load %arg5[%c1_43, %c0_44] : memref<3x128xf32, #tpu.memory_space<vmem>>, vector<1x128xf32>
    %80 = vector.broadcast %79 : vector<1x128xf32> to vector<16x128xf32>
    %81 = arith.addf %78, %80 : vector<16x128xf32>
    %c0_45 = arith.constant 0 : index
    %c0_46 = arith.constant 0 : index
    %82 = vector.load %arg12[%c0_45, %c0_46] : memref<16x128xf32, #tpu.memory_space<vmem>>, vector<16x128xf32>
    tpu.vector_store %arg12[%c0_45, %c0_46], %81 {strides = array<i32>} : memref<16x128xf32, #tpu.memory_space<vmem>>, vector<16x128xf32>,
    %c0_47 = arith.constant 0 : index
    %c0_48 = arith.constant 0 : index
    %83 = vector.load %arg12[%c0_47, %c0_48] : memref<16x128xf32, #tpu.memory_space<vmem>>, vector<16x128xf32>
    %84 = arith.truncf %83 : vector<16x128xf32> to vector<16x128xbf16>
    %c2 = arith.constant 2 : index
    %c0_49 = arith.constant 0 : index
    %c0_50 = arith.constant 0 : index
    %85 = vector.load %arg2[%c2, %c0_49, %c0_50] : memref<3x128x128xbf16, #tpu.memory_space<vmem>>, vector<1x128x128xbf16>
    %86 = vector.shape_cast %85 : vector<1x128x128xbf16> to vector<128x128xbf16>
    %cst_51 = arith.constant dense<0.000000e+00> : vector<16x128xf32>
    %87 = tpu.matmul %84, %86, %cst_51 {dimension_numbers = #tpu.dot_dimension_numbers<[1], [0], [0], [1], [0, 0, 1, 1], [], []>} : vector<16x128xbf16>, vector<128x128xbf16>, vector<16x128xf32> -> vector<16x128xf32>
    %c0_52 = arith.constant 0 : index
    %c0_53 = arith.constant 0 : index
    %88 = vector.load %arg0[%c0_52, %c0_53] : memref<16x16xbf16, #tpu.memory_space<vmem>>, vector<16x16xbf16>
    %89 = arith.truncf %87 : vector<16x128xf32> to vector<16x128xbf16>
    %cst_54 = arith.constant dense<0.000000e+00> : vector<16x128xf32>
    %90 = tpu.matmul %88, %89, %cst_54 {dimension_numbers = #tpu.dot_dimension_numbers<[1], [0], [0], [1], [0, 0, 1, 1], [], []>} : vector<16x16xbf16>, vector<16x128xbf16>, vector<16x128xf32> -> vector<16x128xf32>
    %c2_55 = arith.constant 2 : index
    %c0_56 = arith.constant 0 : index
    %91 = vector.load %arg3[%c2_55, %c0_56] : memref<3x128xf32, #tpu.memory_space<vmem>>, vector<1x128xf32>
    %92 = vector.broadcast %91 : vector<1x128xf32> to vector<16x128xf32>
    %93 = arith.addf %90, %92 : vector<16x128xf32>
    %c0_57 = arith.constant 0 : index
    %c0_58 = arith.constant 0 : index
    %94 = vector.load %arg9[%c0_57, %c0_58] : memref<16x128xf32, #tpu.memory_space<vmem>>, vector<16x128xf32>
    tpu.vector_store %arg9[%c0_57, %c0_58], %93 {strides = array<i32>} : memref<16x128xf32, #tpu.memory_space<vmem>>, vector<16x128xf32>,
    %cst_59 = arith.constant 0.000000e+00 : f32
    %95 = vector.broadcast %cst_59 : f32 to vector<16x128xf32>
    %96 = arith.maximumf %93, %95 : vector<16x128xf32>
    %cst_60 = arith.constant dense<0.000000e+00> : vector<16xf32>
    %97 = vector.multi_reduction <add>, %96, %cst_60 [1] : vector<16x128xf32> to vector<16xf32>
    %98 = vector.shape_cast %97 : vector<16xf32> to vector<16x1xf32>
    %cst_61 = arith.constant 3.125000e-02 : f32
    %99 = vector.broadcast %cst_61 : f32 to vector<16x1xf32>
    %100 = arith.mulf %98, %99 : vector<16x1xf32>
    %101 = vector.broadcast %100 : vector<16x1xf32> to vector<16x128xf32>
    %102 = arith.subf %96, %101 : vector<16x128xf32>
    %103 = vector.broadcast %6 : vector<1x128xf32> to vector<16x128xf32>
    %104 = arith.mulf %102, %103 : vector<16x128xf32>
    %105 = arith.mulf %104, %104 : vector<16x128xf32>
    %cst_62 = arith.constant dense<0.000000e+00> : vector<16xf32>
    %106 = vector.multi_reduction <add>, %105, %cst_62 [1] : vector<16x128xf32> to vector<16xf32>
    %107 = vector.shape_cast %106 : vector<16xf32> to vector<16x1xf32>
    %cst_63 = arith.constant 3.125000e-02 : f32
    %108 = vector.broadcast %cst_63 : f32 to vector<16x1xf32>
    %109 = arith.mulf %107, %108 : vector<16x1xf32>
    %cst_64 = arith.constant 9.99999974E-6 : f32
    %110 = vector.broadcast %cst_64 : f32 to vector<16x1xf32>
    %111 = arith.addf %109, %110 : vector<16x1xf32>
    %112 = math.rsqrt %111 : vector<16x1xf32>
    %113 = vector.broadcast %112 : vector<16x1xf32> to vector<16x128xf32>
    %114 = arith.mulf %104, %113 : vector<16x128xf32>
    %c2_65 = arith.constant 2 : index
    %c0_66 = arith.constant 0 : index
    %115 = vector.load %arg4[%c2_65, %c0_66] : memref<3x128xf32, #tpu.memory_space<vmem>>, vector<1x128xf32>
    %116 = vector.broadcast %115 : vector<1x128xf32> to vector<16x128xf32>
    %117 = arith.mulf %114, %116 : vector<16x128xf32>
    %c2_67 = arith.constant 2 : index
    %c0_68 = arith.constant 0 : index
    %118 = vector.load %arg5[%c2_67, %c0_68] : memref<3x128xf32, #tpu.memory_space<vmem>>, vector<1x128xf32>
    %119 = vector.broadcast %118 : vector<1x128xf32> to vector<16x128xf32>
    %120 = arith.addf %117, %119 : vector<16x128xf32>
    %c0_69 = arith.constant 0 : index
    %c0_70 = arith.constant 0 : index
    %121 = vector.load %arg12[%c0_69, %c0_70] : memref<16x128xf32, #tpu.memory_space<vmem>>, vector<16x128xf32>
    tpu.vector_store %arg12[%c0_69, %c0_70], %120 {strides = array<i32>} : memref<16x128xf32, #tpu.memory_space<vmem>>, vector<16x128xf32>,
    %c0_71 = arith.constant 0 : index
    %c0_72 = arith.constant 0 : index
    %122 = vector.load %arg12[%c0_71, %c0_72] : memref<16x128xf32, #tpu.memory_space<vmem>>, vector<16x128xf32>
    %123 = arith.truncf %122 : vector<16x128xf32> to vector<16x128xbf16>
    %c0_73 = arith.constant 0 : index
    %c0_74 = arith.constant 0 : index
    %124 = vector.load %arg6[%c0_73, %c0_74] : memref<2x16xbf16, #tpu.memory_space<vmem>>, vector<2x16xbf16>
    %cst_75 = arith.constant dense<0.000000e+00> : vector<2x128xf32>
    %125 = tpu.matmul %124, %123, %cst_75 {dimension_numbers = #tpu.dot_dimension_numbers<[1], [0], [0], [1], [0, 0, 1, 1], [], []>} : vector<2x16xbf16>, vector<16x128xbf16>, vector<2x128xf32> -> vector<2x128xf32>
    %c0_76 = arith.constant 0 : index
    %c0_77 = arith.constant 0 : index
    %126 = vector.load %arg7[%c0_76, %c0_77] : memref<128x128xf32, #tpu.memory_space<vmem>>, vector<128x128xf32>
    %cst_78 = arith.constant dense<0.000000e+00> : vector<2x128xf32>
    %127 = tpu.matmul %125, %126, %cst_78 {dimension_numbers = #tpu.dot_dimension_numbers<[1], [0], [0], [1], [0, 0, 1, 1], [], []>} : vector<2x128xf32>, vector<128x128xf32>, vector<2x128xf32> -> vector<2x128xf32>
    %c0_79 = arith.constant 0 : index
    %c0_80 = arith.constant 0 : index
    %128 = vector.load %arg8[%c0_79, %c0_80] : memref<1x128xf32, #tpu.memory_space<vmem>>, vector<1x128xf32>
    %129 = vector.broadcast %128 : vector<1x128xf32> to vector<2x128xf32>
    %130 = arith.addf %127, %129 : vector<2x128xf32>
    %c0_81 = arith.constant 0 : index
    %c0_82 = arith.constant 0 : index
    %131 = vector.load %arg10[%c0_81, %c0_82] : memref<2x128xf32, #tpu.memory_space<vmem>>, vector<2x128xf32>
    tpu.vector_store %arg10[%c0_81, %c0_82], %130 {strides = array<i32>} : memref<2x128xf32, #tpu.memory_space<vmem>>, vector<2x128xf32>,
    %cst_83 = arith.constant dense<0xFF800000> : vector<2xf32>
    %132 = vector.multi_reduction <maximumf>, %130, %cst_83 [1] : vector<2x128xf32> to vector<2xf32>
    %133 = vector.shape_cast %132 : vector<2xf32> to vector<2x1xf32>
    %134 = vector.broadcast %133 : vector<2x1xf32> to vector<2x128xf32>
    %135 = arith.subf %130, %134 : vector<2x128xf32>
    %136 = math.exp %135 : vector<2x128xf32>
    %cst_84 = arith.constant dense<0.000000e+00> : vector<2xf32>
    %137 = vector.multi_reduction <add>, %136, %cst_84 [1] : vector<2x128xf32> to vector<2xf32>
    %138 = vector.shape_cast %137 : vector<2xf32> to vector<2x1xf32>
    %139 = math.log %138 : vector<2x1xf32>
    %140 = vector.broadcast %139 : vector<2x1xf32> to vector<2x128xf32>
    %141 = arith.subf %135, %140 : vector<2x128xf32>
    %c0_85 = arith.constant 0 : index
    %c0_86 = arith.constant 0 : index
    %142 = vector.load %arg11[%c0_85, %c0_86] : memref<2x128xf32, #tpu.memory_space<vmem>>, vector<2x128xf32>
    tpu.vector_store %arg11[%c0_85, %c0_86], %141 {strides = array<i32>} : memref<2x128xf32, #tpu.memory_space<vmem>>, vector<2x128xf32>,
    return
  }
}

</mosaic_0001>

<bundles_post_ra>
// kernel: gnn_forward.1
= control target key start
LH: loop header
LB: loop body
LE: loop exit
PB: predicated region body
PF: predicated region fallthrough
CT: control target
= control target key end

     0   :  { %17 = vsyncpa [#allocation4], 0  ;;  %v1261_v1 = vmov 0.0   ;;  %vm1262_vm0 = vmmov 0   ;;  %s1597_s0 = inlined_call_operand.vmem [shape: bf16[16,16], index: 0, kind: input, shape index: {}]   ;;  %s1598_s1 = inlined_call_operand.vmem [shape: f32[16,128], index: 1, kind: input, shape index: {}]   ;;  %s1599_s2 = inlined_call_operand.vmem [shape: bf16[3,128,128], index: 2, kind: input, shape index: {}]   ;;  %s1600_s3 = inlined_call_operand.vmem [shape: f32[3,128], index: 3, kind: input, shape index: {}]   ;;  %s1601_s4 = inlined_call_operand.vmem [shape: f32[3,128], index: 4, kind: input, shape index: {}]   ;;  %s1602_s5 = inlined_call_operand.vmem [shape: f32[3,128], index: 5, kind: input, shape index: {}]   ;;  %s1603_s6 = inlined_call_operand.vmem [shape: bf16[2,16], index: 6, kind: input, shape index: {}]   ;;  %s1604_s7 = inlined_call_operand.vmem [shape: f32[128,128], index: 7, kind: input, shape index: {}]   ;;  %s1605_s8 = inlined_call_operand.vmem [shape: f32[1,128], index: 8, kind: input, shape index: {}]   ;;  %s1606_s9 = inlined_call_operand.hbm [shape: f32[16,128], index: 9, kind: output, shape index: {0}]   ;;  %s1607_s10 = inlined_call_operand.hbm [shape: f32[2,128], index: 10, kind: output, shape index: {1}]   ;;  %s1608_s11 = inlined_call_operand.hbm [shape: f32[2,128], index: 11, kind: output, shape index: {2}]  }
   0x1   :  { %v1148_v0 = vld [vmem:[%s1599_s2] sm:$0xff]   ;;  %997 = vmatprep.subr.bf16.mxu0 %v1261_v1  ;;  %1017 = vmatprep.subr.bf16.mxu1 %v1261_v1  ;;  %v1149_v2 = vld [vmem:[%s1599_s2 + $0x8] sm:$0xff]   ;;  %v1150_v3 = vld [vmem:[%s1599_s2 + $0x10] sm:$0xff]  }
   0x2   :  { %998 = vmatpush3.bf16.msra.mxu0 %v1148_v0  ;;  %1013 = vmatprep.mubr.msk.bf16.mxu0 %vm1262_vm0, %v1261_v1  ;;  %v1151_v4 = vld [vmem:[%s1599_s2 + $0x18] sm:$0xff]   ;;  %v1152_v5 = vld [vmem:[%s1599_s2 + $0x20] sm:$0xff]   ;;  %v1153_v6 = vld [vmem:[%s1599_s2 + $0x28] sm:$0xff]  }
   0x3   :  { %999 = vmatprep.subr.bf16.mxu0 %v1261_v1  ;;  %1019 = vmatprep.mubr.msk.bf16.mxu1 %vm1262_vm0, %v1261_v1 }
   0x6   :  { %1000 = vmatpush3.bf16.msra.mxu0 %v1149_v2 }
   0x7   :  { %1001 = vmatprep.subr.bf16.mxu0 %v1261_v1 }
   0xa   :  { %1002 = vmatpush3.bf16.msra.mxu0 %v1150_v3 }
   0xb   :  { %1003 = vmatprep.subr.bf16.mxu0 %v1261_v1 }
   0xe   :  { %1004 = vmatpush3.bf16.msra.mxu0 %v1151_v4 }
   0xf   :  { %1005 = vmatprep.subr.bf16.mxu0 %v1261_v1 }
  0x12   :  { %1006 = vmatpush3.bf16.msra.mxu0 %v1152_v5 }
  0x13   :  { %1007 = vmatprep.subr.bf16.mxu0 %v1261_v1 }
  0x14   :  { %18 = vsyncpa [#allocation6], 0  ;;  %v1154_v7 = vld [vmem:[%s1599_s2 + $0x30] sm:$0xff]   ;;  %v1155_v8 = vld [vmem:[%s1599_s2 + $0x38] sm:$0xff]   ;;  %vm168_vm1 = vcmask 130048   ;;  %v42_v28 = vlaneseq  ;;  %vm814_vm3 = vcmask 1041408  }
  0x15   :  { %v38_v9 = vld [vmem:[%s1598_s1] sm:$0xff]  ;;  %v39_v10 = vld [vmem:[%s1598_s1 + $0x8] sm:$0xff]  ;;  %v1159_v42 = vld [vmem:[%s1599_s2 + $0x50] sm:$0xff]   ;;  %s1265_s19 = smov [#allocation3]  }
  0x16   :  { %1008 = vmatpush3.bf16.msra.mxu0 %v1153_v6  ;;  %v49_v11 = vpack.c.bf16 %v39_v10, %v38_v9  ;;  %v1156_v17 = vld [vmem:[%s1597_s0] sm:$0xff]   ;;  %v43_v29 = vand.u32 127, %v42_v28  ;;  %v1158_v41 = vld [vmem:[%s1599_s2 + $0x48] sm:$0xff]   ;;  %v1160_v43 = vld [vmem:[%s1599_s2 + $0x58] sm:$0xff]   ;;  %s833_s1 = sshll.u32 %s1265_s19, 4  ;;  %s1554_s1 = int_to_ptr.vmem [resolvable:$true] %s833_s1 }
  0x17   :  { %1009 = vmatprep.subr.bf16.mxu0 %v1261_v1  ;;  %v880_v18 = vld [vmem:[%s1600_s3] ss:$0 sm:$0xff]  ;;  %v1162_v45 = vld [vmem:[%s1599_s2 + $0x68] sm:$0xff]   ;;  %v1163_v46 = vld [vmem:[%s1599_s2 + $0x70] sm:$0xff]  }
  0x18   :  { %v1157_v27 = vld [vmem:[%s1599_s2 + $0x40] sm:$0xff]   ;;  %vm44_vm2 = vcmp.lt.s32.totalorder %v43_v29, 32  ;;  %v1164_v47 = vld [vmem:[%s1599_s2 + $0x78] sm:$0xff]   ;;  %v1168_v29 = vld [vmem:[%s1599_s2 + $0x90] sm:$0xff]  }
  0x19   :  { %v1390_v32 = vsel %vm44_vm2, 1.0, %v1261_v1  ;;  %v1161_v44 = vld [vmem:[%s1599_s2 + $0x60] sm:$0xff]  }
  0x1a   :  { %1010 = vmatpush3.bf16.msra.mxu0 %v1154_v7  ;;  %v883_v56 = vld [vmem:[%s1601_s4] ss:$0 sm:$0xff] }
  0x1b   :  { %1011 = vmatprep.subr.bf16.mxu0 %v1261_v1  ;;  %v884_v60 = vld [vmem:[%s1602_s5] ss:$0 sm:$0xff] }
  0x1c   :  { %v1165_v7 = vld [vmem:[%s1597_s0] sm:$0xff]  }
  0x1e   :  { %1012 = vmatpush3.bf16.msra.mxu0 %v1155_v8  ;;  %v909_v8 = vld [vmem:[%s1600_s3 + $0x1] ss:$0 sm:$0xff] }
  0x1f   :  { %1069 = vmatprep.subr.bf16.mxu0 %v1261_v1 }
  0x21   :  { %1014 = vmatmul.mubr.bf16.vlgmr.msra.gmra.mrb[0].mxu0 %v49_v11 }
  0x22   :  { %1071 = vmatprep.mubr.msk.bf16.mxu0 %vm1262_vm0, %v1261_v1 }
  0xf4   :  { %v148_v12 = vpop.f32.mrb[0].mxu0 }
  0xf5   :  { %v1015_v13 = vpop.f32.mrb[1].mxu0 }
  0xf6   :  { %v151_v14 = vpop.f32.mrb[2].mxu0 }
  0xf7   :  { %v157_v15 = vpack.c.bf16 %v151_v14, %v148_v12  ;;  %v1016_v16 = vpop.f32.mrb[3].mxu0 }
  0xf9   :  { %1018 = vmatpush3.bf16.msra.mxu1 %v157_v15 }
  0xfa   :  { %1023 = vmatprep.subr.bf16.mxu1 %v1261_v1 }
  0xfc   :  { %1020 = vmatmul.mubr.msk.bf16.vlgmr.msra.gmra.mrb[0].mxu1 %vm168_vm1, %v1156_v17  ;;  %v1166_v17 = vld [vmem:[%s1599_s2 + $0x80] sm:$0xff]  }
  0xfd   :  { %1039 = vmatprep.mubr.msk.bf16.mxu1 %vm1262_vm0, %v1261_v1  ;;  %1024 = vmatpush3.bf16.msra.mxu1 %v1157_v27 }
  0xfe   :  { %1025 = vmatprep.subr.bf16.mxu1 %v1261_v1 }
 0x101   :  { %1026 = vmatpush3.bf16.msra.mxu1 %v1158_v41 }
 0x102   :  { %1027 = vmatprep.subr.bf16.mxu1 %v1261_v1 }
 0x105   :  { %1028 = vmatpush3.bf16.msra.mxu1 %v1159_v42 }
 0x106   :  { %1029 = vmatprep.subr.bf16.mxu1 %v1261_v1 }
 0x109   :  { %1030 = vmatpush3.bf16.msra.mxu1 %v1160_v43  ;;  %v912_v43 = vld [vmem:[%s1601_s4 + $0x1] ss:$0 sm:$0xff] }
 0x10a   :  { %1031 = vmatprep.subr.bf16.mxu1 %v1261_v1 }
 0x10d   :  { %1032 = vmatpush3.bf16.msra.mxu1 %v1161_v44 }
 0x10e   :  { %1033 = vmatprep.subr.bf16.mxu1 %v1261_v1 }
 0x111   :  { %1034 = vmatpush3.bf16.msra.mxu1 %v1162_v45 }
 0x112   :  { %1035 = vmatprep.subr.bf16.mxu1 %v1261_v1 }
 0x115   :  { %1036 = vmatpush3.bf16.msra.mxu1 %v1163_v46 }
 0x116   :  { %1037 = vmatprep.subr.bf16.mxu1 %v1261_v1 }
 0x119   :  { %1038 = vmatpush3.bf16.msra.mxu1 %v1164_v47 }
 0x11a   :  { %1043 = vmatprep.subr.bf16.mxu1 %v1261_v1 }
 0x1cf   :  { %v206_v19 = vpop.f32.mrb[0].mxu1 }
 0x1d0   :  { %v207_v20 = vadd.f32 %v880_v18, %v206_v19  ;;  %v1021_v21 = vpop.f32.mrb[1].mxu1 }
 0x1d1   :  { %v209_v22 = vpop.f32.mrb[2].mxu1 }
 0x1d2   :  { %v213_v23 = vmax.f32 %v207_v20, 0.0  ;;  %v210_v24 = vadd.f32 %v880_v18, %v209_v22  ;;  %v1022_v25 = vpop.f32.mrb[3].mxu1  ;;  %v1167_v18 = vld [vmem:[%s1599_s2 + $0x88] sm:$0xff]  }
 0x1d4   :  { %215 = vadd.xlane.f32.xlu0 %v213_v23  ;;  %v214_v26 = vmax.f32 %v210_v24, 0.0 }
 0x1d8   :  { %217 = vadd.xlane.f32.xlu0 %v214_v26 }
 0x261   :  { %v216_v30 = vpop.xlane.xlu0 %215 }
 0x262   :  { %v219_v31 = vmul.f32 0.03125, %v216_v30  ;;  %v1169_v30 = vld [vmem:[%s1599_s2 + $0x98] sm:$0xff]  }
 0x264   :  { %v221_v33 = vsub.f32 %v213_v23, %v219_v31  ;;  %v1170_v31 = vld [vmem:[%s1599_s2 + $0xa0] sm:$0xff]  }
 0x265   :  { %v218_v34 = vpop.xlane.xlu0 %217 }
 0x266   :  { %v220_v35 = vmul.f32 0.03125, %v218_v34  ;;  %v223_v36 = vmul.f32 %v1390_v32, %v221_v33  ;;  %v1171_v33 = vld [vmem:[%s1599_s2 + $0xa8] sm:$0xff]   ;;  %v1172_v34 = vld [vmem:[%s1599_s2 + $0xb0] sm:$0xff]  }
 0x268   :  { %v222_v37 = vsub.f32 %v214_v26, %v220_v35  ;;  %v225_v38 = vmul.f32 %v223_v36, %v223_v36  ;;  %v1173_v35 = vld [vmem:[%s1599_s2 + $0xb8] sm:$0xff]  }
 0x26a   :  { %227 = vadd.xlane.f32.xlu1 %v225_v38  ;;  %v224_v39 = vmul.f32 %v1390_v32, %v222_v37 }
 0x26c   :  { %v226_v40 = vmul.f32 %v224_v39, %v224_v39 }
 0x26e   :  { %229 = vadd.xlane.f32.xlu1 %v226_v40 }
 0x2f7   :  { %v228_v48 = vpop.xlane.xlu1 %227 }
 0x2f8   :  { %v231_v49 = vmul.f32 0.03125, %v228_v48  ;;  %v913_v48 = vld [vmem:[%s1602_s5 + $0x1] ss:$0 sm:$0xff] }
 0x2fa   :  { %v233_v50 = vadd.f32 1e-05, %v231_v49 }
 0x2fb   :  { %v230_v51 = vpop.xlane.xlu1 %229 }
 0x2fc   :  { %1175 = vrsqrt.f32 %v233_v50  ;;  %v232_v52 = vmul.f32 0.03125, %v230_v51 }
 0x2fe   :  { %v234_v53 = vadd.f32 1e-05, %v232_v52 }
 0x300   :  { %1177 = vrsqrt.f32 %v234_v53 }
 0x306   :  { %v1176_v54 = vpop.eup %1175 }
 0x307   :  { %v237_v55 = vmul.f32 %v1176_v54, %v223_v36 }
 0x309   :  { %v244_v59 = vmul.f32 %v883_v56, %v237_v55 }
 0x30a   :  { %v1178_v57 = vpop.eup %1177 }
 0x30b   :  { %v238_v58 = vmul.f32 %v1178_v57, %v224_v39  ;;  %v251_v62 = vadd.f32 %v884_v60, %v244_v59  ;;  %v938_v59 = vld [vmem:[%s1600_s3 + $0x2] ss:$0 sm:$0xff] }
 0x30d   :  { %v245_v61 = vmul.f32 %v883_v56, %v238_v58  ;;  %v1174_v58 = vld [vmem:[%s1597_s0] sm:$0xff]  }
 0x30f   :  { %v252_v63 = vadd.f32 %v884_v60, %v245_v61 }
 0x311   :  { %v257_v0 = vpack.c.bf16 %v252_v63, %v251_v62 }
 0x313   :  { %1040 = vmatmul.mubr.bf16.vlgmr.msra.gmra.mrb[4].mxu1 %v257_v0 }
 0x314   :  { %1045 = vmatprep.mubr.msk.bf16.mxu1 %vm1262_vm0, %v1261_v1 }
 0x3e6   :  { %v357_v2 = vpop.f32.mrb[4].mxu1 }
 0x3e7   :  { %v1041_v3 = vpop.f32.mrb[5].mxu1 }
 0x3e8   :  { %v360_v4 = vpop.f32.mrb[6].mxu1 }
 0x3e9   :  { %v366_v5 = vpack.c.bf16 %v360_v4, %v357_v2  ;;  %v1042_v6 = vpop.f32.mrb[7].mxu1 }
 0x3eb   :  { %1044 = vmatpush3.bf16.msra.mxu1 %v366_v5 }
 0x3ec   :  { %1049 = vmatprep.subr.bf16.mxu1 %v1261_v1 }
 0x3ee   :  { %1046 = vmatmul.mubr.msk.bf16.vlgmr.msra.gmra.mrb[8].mxu1 %vm168_vm1, %v1165_v7 }
 0x3ef   :  { %1065 = vmatprep.mubr.msk.bf16.mxu1 %vm1262_vm0, %v1261_v1  ;;  %1050 = vmatpush3.bf16.msra.mxu1 %v1166_v17 }
 0x3f0   :  { %1051 = vmatprep.subr.bf16.mxu1 %v1261_v1 }
 0x3f3   :  { %1052 = vmatpush3.bf16.msra.mxu1 %v1167_v18 }
 0x3f4   :  { %1053 = vmatprep.subr.bf16.mxu1 %v1261_v1 }
 0x3f7   :  { %1054 = vmatpush3.bf16.msra.mxu1 %v1168_v29 }
 0x3f8   :  { %1055 = vmatprep.subr.bf16.mxu1 %v1261_v1 }
 0x3fb   :  { %1056 = vmatpush3.bf16.msra.mxu1 %v1169_v30  ;;  %v720_v30 = vld [vmem:[%s1604_s7] sm:$0xff] }
 0x3fc   :  { %1057 = vmatprep.subr.bf16.mxu1 %v1261_v1 }
 0x3ff   :  { %1058 = vmatpush3.bf16.msra.mxu1 %v1170_v31  ;;  %v721_v31 = vld [vmem:[%s1604_s7 + $0x8] sm:$0xff] }
 0x400   :  { %1059 = vmatprep.subr.bf16.mxu1 %v1261_v1 }
 0x403   :  { %1060 = vmatpush3.bf16.msra.mxu1 %v1171_v33 }
 0x404   :  { %1061 = vmatprep.subr.bf16.mxu1 %v1261_v1 }
 0x407   :  { %1062 = vmatpush3.bf16.msra.mxu1 %v1172_v34  ;;  %v676_v34 = vld [vmem:[%s1603_s6] sm:$0x1] }
 0x408   :  { %1063 = vmatprep.subr.bf16.mxu1 %v1261_v1 }
 0x40b   :  { %1064 = vmatpush3.bf16.msra.mxu1 %v1173_v35  ;;  %v1117_v35 = vpack.c.bf16 %v721_v31, %v720_v30 }
 0x4c1   :  { %v414_v9 = vpop.f32.mrb[8].mxu1 }
 0x4c2   :  { %v415_v10 = vadd.f32 %v909_v8, %v414_v9  ;;  %v1047_v11 = vpop.f32.mrb[9].mxu1 }
 0x4c3   :  { %v417_v12 = vpop.f32.mrb[10].mxu1 }
 0x4c4   :  { %v421_v13 = vmax.f32 %v415_v10, 0.0  ;;  %v418_v14 = vadd.f32 %v909_v8, %v417_v12  ;;  %v1048_v15 = vpop.f32.mrb[11].mxu1 }
 0x4c6   :  { %v422_v16 = vmax.f32 %v418_v14, 0.0  ;;  %423 = vadd.xlane.f32.xlu0 %v421_v13 }
 0x4c8   :  { %425 = vadd.xlane.f32.xlu1 %v422_v16 }
 0x553   :  { %v424_v19 = vpop.xlane.xlu0 %423 }
 0x554   :  { %v427_v20 = vmul.f32 0.03125, %v424_v19 }
 0x555   :  { %v426_v21 = vpop.xlane.xlu1 %425 }
 0x556   :  { %v429_v22 = vsub.f32 %v421_v13, %v427_v20  ;;  %v428_v23 = vmul.f32 0.03125, %v426_v21 }
 0x558   :  { %v430_v24 = vsub.f32 %v422_v16, %v428_v23  ;;  %v431_v25 = vmul.f32 %v1390_v32, %v429_v22  ;;  %v941_v22 = vld [vmem:[%s1601_s4 + $0x2] ss:$0 sm:$0xff] }
 0x55a   :  { %v433_v26 = vmul.f32 %v431_v25, %v431_v25  ;;  %v432_v27 = vmul.f32 %v1390_v32, %v430_v24 }
 0x55c   :  { %435 = vadd.xlane.f32.xlu0 %v433_v26  ;;  %v434_v28 = vmul.f32 %v432_v27, %v432_v27  ;;  %v942_v26 = vld [vmem:[%s1602_s5 + $0x2] ss:$0 sm:$0xff] }
 0x55e   :  { %437 = vadd.xlane.f32.xlu1 %v434_v28 }
 0x5e9   :  { %v436_v36 = vpop.xlane.xlu0 %435 }
 0x5ea   :  { %v439_v37 = vmul.f32 0.03125, %v436_v36  ;;  %v1263_v36 = vmov 0.0|0.0  }
 0x5eb   :  { %v438_v38 = vpop.xlane.xlu1 %437 }
 0x5ec   :  { %v441_v39 = vadd.f32 1e-05, %v439_v37  ;;  %v440_v40 = vmul.f32 0.03125, %v438_v38  ;;  %v722_v37 = vld [vmem:[%s1604_s7 + $0x10] sm:$0xff]  ;;  %v723_v38 = vld [vmem:[%s1604_s7 + $0x18] sm:$0xff] }
 0x5ee   :  { %1179 = vrsqrt.f32 %v441_v39  ;;  %v442_v41 = vadd.f32 1e-05, %v440_v40  ;;  %v1120_v39 = vpack.c.bf16 %v723_v38, %v722_v37  ;;  %v724_v40 = vld [vmem:[%s1604_s7 + $0x20] sm:$0xff] }
 0x5f0   :  { %1181 = vrsqrt.f32 %v442_v41  ;;  %v725_v41 = vld [vmem:[%s1604_s7 + $0x28] sm:$0xff] }
 0x5f8   :  { %v1180_v42 = vpop.eup %1179 }
 0x5f9   :  { %v445_v44 = vmul.f32 %v1180_v42, %v431_v25  ;;  %v1123_v42 = vpack.c.bf16 %v725_v41, %v724_v40 }
 0x5fa   :  { %v1182_v45 = vpop.eup %1181 }
 0x5fb   :  { %v446_v46 = vmul.f32 %v1182_v45, %v432_v27  ;;  %v452_v47 = vmul.f32 %v912_v43, %v445_v44  ;;  %v728_v45 = vld [vmem:[%s1604_s7 + $0x40] sm:$0xff] }
 0x5fd   :  { %v453_v49 = vmul.f32 %v912_v43, %v446_v46  ;;  %v459_v50 = vadd.f32 %v913_v48, %v452_v47  ;;  %v726_v43 = vld [vmem:[%s1604_s7 + $0x30] sm:$0xff]  ;;  %v729_v46 = vld [vmem:[%s1604_s7 + $0x48] sm:$0xff] }
 0x5fe   :  { %v1129_v47 = vpack.c.bf16 %v729_v46, %v728_v45 }
 0x5ff   :  { %v460_v51 = vadd.f32 %v913_v48, %v453_v49  ;;  %v730_v48 = vld [vmem:[%s1604_s7 + $0x50] sm:$0xff]  ;;  %v731_v49 = vld [vmem:[%s1604_s7 + $0x58] sm:$0xff] }
 0x601   :  { %v465_v52 = vpack.c.bf16 %v460_v51, %v459_v50  ;;  %v1132_v50 = vpack.c.bf16 %v731_v49, %v730_v48  ;;  %v732_v51 = vld [vmem:[%s1604_s7 + $0x60] sm:$0xff] }
 0x603   :  { %1066 = vmatmul.mubr.bf16.vlgmr.msra.gmra.mrb[12].mxu1 %v465_v52  ;;  %v733_v52 = vld [vmem:[%s1604_s7 + $0x68] sm:$0xff] }
 0x6d6   :  { %v565_v53 = vpop.f32.mrb[12].mxu1 }
 0x6d7   :  { %v1067_v54 = vpop.f32.mrb[13].mxu1 }
 0x6d8   :  { %v568_v55 = vpop.f32.mrb[14].mxu1  ;;  %v734_v54 = vld [vmem:[%s1604_s7 + $0x70] sm:$0xff] }
 0x6d9   :  { %v574_v56 = vpack.c.bf16 %v568_v55, %v565_v53  ;;  %v1068_v57 = vpop.f32.mrb[15].mxu1  ;;  %v1135_v53 = vpack.c.bf16 %v733_v52, %v732_v51  ;;  %v735_v55 = vld [vmem:[%s1604_s7 + $0x78] sm:$0xff] }
 0x6db   :  { %1070 = vmatpush3.bf16.msra.mxu0 %v574_v56  ;;  %v1138_v56 = vpack.c.bf16 %v735_v55, %v734_v54 }
 0x6dc   :  { %1075 = vmatprep.subr.bf16.mxu0 %v1261_v1 }
 0x6de   :  { %1072 = vmatmul.mubr.msk.bf16.vlgmr.msra.gmra.mrb[4].mxu0 %vm168_vm1, %v1174_v58 }
 0x6df   :  { %1077 = vmatprep.mubr.msk.bf16.mxu0 %vm1262_vm0, %v1261_v1 }
 0x7b1   :  { %v622_v60 = vpop.f32.mrb[4].mxu0 }
 0x7b2   :  { %v623_v61 = vadd.f32 %v938_v59, %v622_v60  ;;  %v1073_v62 = vpop.f32.mrb[5].mxu0 }
 0x7b3   :  { %v625_v63 = vpop.f32.mrb[6].mxu0 }
 0x7b4   :  { %629 = vst [vmem:[#allocation3] sm:$0xff] %v623_v61  ;;  %v626_v0 = vadd.f32 %v938_v59, %v625_v63  ;;  %v1074_v2 = vpop.f32.mrb[7].mxu0  ;;  %v631_v3 = vmax.f32 %v623_v61, 0.0  ;;  %v944_v61 = vld [vmem:[%s1605_s8] ss:$0 sm:$0xff] }
 0x7b6   :  { %630 = vst [vmem:[#allocation3 + $0x8] sm:$0xff] %v626_v0  ;;  %633 = vadd.xlane.f32.xlu0 %v631_v3  ;;  %v632_v4 = vmax.f32 %v626_v0, 0.0 }
 0x7b8   :  { %635 = vadd.xlane.f32.xlu1 %v632_v4 }
 0x843   :  { %v634_v5 = vpop.xlane.xlu0 %633 }
 0x844   :  { %v637_v6 = vmul.f32 0.03125, %v634_v5 }
 0x845   :  { %v636_v7 = vpop.xlane.xlu1 %635 }
 0x846   :  { %v639_v8 = vsub.f32 %v631_v3, %v637_v6  ;;  %v638_v9 = vmul.f32 0.03125, %v636_v7 }
 0x848   :  { %v640_v10 = vsub.f32 %v632_v4, %v638_v9  ;;  %v641_v11 = vmul.f32 %v1390_v32, %v639_v8 }
 0x84a   :  { %v643_v12 = vmul.f32 %v641_v11, %v641_v11  ;;  %v642_v13 = vmul.f32 %v1390_v32, %v640_v10 }
 0x84c   :  { %645 = vadd.xlane.f32.xlu0 %v643_v12  ;;  %v644_v14 = vmul.f32 %v642_v13, %v642_v13 }
 0x84e   :  { %647 = vadd.xlane.f32.xlu1 %v644_v14 }
 0x8d9   :  { %v646_v15 = vpop.xlane.xlu0 %645 }
 0x8da   :  { %v649_v16 = vmul.f32 0.03125, %v646_v15 }
 0x8db   :  { %v648_v17 = vpop.xlane.xlu1 %647 }
 0x8dc   :  { %v651_v18 = vadd.f32 1e-05, %v649_v16  ;;  %v650_v19 = vmul.f32 0.03125, %v648_v17 }
 0x8de   :  { %1183 = vrsqrt.f32 %v651_v18  ;;  %v652_v20 = vadd.f32 1e-05, %v650_v19 }
 0x8e0   :  { %1185 = vrsqrt.f32 %v652_v20 }
 0x8e8   :  { %v1184_v21 = vpop.eup %1183 }
 0x8e9   :  { %v655_v23 = vmul.f32 %v1184_v21, %v641_v11 }
 0x8ea   :  { %v1186_v24 = vpop.eup %1185 }
 0x8eb   :  { %v656_v25 = vmul.f32 %v1186_v24, %v642_v13  ;;  %v662_v32 = vmul.f32 %v941_v22, %v655_v23 }
 0x8ed   :  { %v663_v27 = vmul.f32 %v941_v22, %v656_v25  ;;  %v669_v28 = vadd.f32 %v942_v26, %v662_v32 }
 0x8ef   :  { %v670_v29 = vadd.f32 %v942_v26, %v663_v27 }
 0x8f1   :  { %v675_v33 = vpack.c.bf16 %v670_v29, %v669_v28 }
 0x8f3   :  { %1076 = vmatpush3.bf16.msra.mxu0 %v675_v33 }
 0x8f4   :  { %1116 = vmatprep.subr.bf16.mxu0 %v1263_v36 }
 0x8f6   :  { %1078 = vmatmul.mubr.msk.bf16.vlgmr.msra.gmra.mrb[8].mxu0 %vm168_vm1, %v676_v34 }
 0x8f7   :  { %1118 = vmatpush3.bf16.msra.mxu0 %v1117_v35  ;;  %1113 = vmatprep.mubr.msk.f32.mxu0 %vm1262_vm0, %v1261_v1  ;;  %v727_v1 = vld [vmem:[%s1604_s7 + $0x38] sm:$0xff]  ;;  %s1264_s7 = smov [#allocation5]  }
 0x8f8   :  { %1119 = vmatprep.subr.bf16.mxu0 %v1263_v36  ;;  %v1126_v44 = vpack.c.bf16 %v727_v1, %v726_v43  ;;  %s846_s6 = sshll.u32 %s1264_s7, 4  ;;  %s847_s6 = int_to_ptr.vmem [resolvable:$true] %s846_s6 }
 0x8f9   :  { %s1191_s8 = scalar_lea.vmem %s847_s6, 32  ;;  %p1196_p1 = scmp.lt.s32.totalorder %s847_s6, %s847_s6 }
 0x8fa   :  { %p1192_p0 = scmp.ne.s32.totalorder %s847_s6, %s1191_s8  ;;  %p1197_p2 = scmp.lt.s32.totalorder %s1191_s8, %s1191_s8 }
 0x8fb   :  { %1121 = vmatpush3.bf16.msra.mxu0 %v1120_v39 }
 0x8fc   :  { %1122 = vmatprep.subr.bf16.mxu0 %v1263_v36  ;;  %p1198_p3 = por %p1197_p2, %p1196_p1 }
 0x8fe   :  { %p1199_p4 = pnand %p1198_p3, %p1192_p0 }
 0x8ff   :  { %1124 = vmatpush3.bf16.msra.mxu0 %v1123_v42 }
 0x900   :  { %1125 = vmatprep.subr.bf16.mxu0 %v1263_v36 }
 0x903   :  { %1127 = vmatpush3.bf16.msra.mxu0 %v1126_v44 }
 0x904   :  { %1128 = vmatprep.subr.bf16.mxu0 %v1263_v36 }
 0x907   :  { %1130 = vmatpush3.bf16.msra.mxu0 %v1129_v47 }
 0x908   :  { %1131 = vmatprep.subr.bf16.mxu0 %v1263_v36 }
 0x90b   :  { %1133 = vmatpush3.bf16.msra.mxu0 %v1132_v50 }
 0x90c   :  { %1134 = vmatprep.subr.bf16.mxu0 %v1263_v36 }
 0x90f   :  { %1136 = vmatpush3.bf16.msra.mxu0 %v1135_v53 }
 0x910   :  { %1137 = vmatprep.subr.bf16.mxu0 %v1263_v36 }
 0x913   :  { %1139 = vmatpush3.bf16.msra.mxu0 %v1138_v56 }
 0x9c9   :  { %v714_v57 = vpop.f32.mrb[8].mxu0 }
 0x9ca   :  { %1114 = vmatmul.mubr.f32.vlgmr.msra.gmra.mrb[12].mxu0 %v714_v57  ;;  %v1079_v58 = vpop.f32.mrb[9].mxu0 }
 0x9cb   :  { %v717_v59 = vpop.f32.mrb[10].mxu0 }
 0x9cc   :  { %v1080_v60 = vpop.f32.mrb[11].mxu0 }
 0xa9d   :  { %v809_v62 = vpop.f32.mrb[12].mxu0 }
 0xa9e   :  { %v810_v63 = vadd.f32 %v944_v61, %v809_v62  ;;  %v1115_v0 = vpop.f32.mrb[13].mxu0 }
 0xaa0   :  { %813 = vst [vmem:[#allocation5] sm:$0x3] %v810_v63  ;;  %v815_v2 = vsel %vm814_vm3, %v810_v63, -inf }
 0xaa1   :  { %816 = vmax.xlane.f32.xlu0 %v815_v2 }
 0xb2e   :  { %v817_v3 = vpop.xlane.xlu0 %816 }
 0xb2f   :  { %v818_v4 = vsub.f32 %v810_v63, %v817_v3 }
 0xb31   :  { %v819_v5 = vmul.f32 1.442695, %v818_v4 }
 0xb33   :  { %1187 = vpow2.f32 %v819_v5 }
 0xb3d   :  { %v1188_v6 = vpop.eup %1187 }
 0xb3e   :  { %v821_v7 = vsel %vm814_vm3, %v1188_v6, 0.0 }
 0xb3f   :  { %822 = vadd.xlane.f32.xlu1 %v821_v7 }
 0xb40   :  { %1202 = shalt.err (!%p1199_p4)
}
 0xb41   :  { %s1203_s22 = scalar_lea.hbm %s1607_s10, 32 }
 0xb42   :  { %p1204_p5 = scmp.ne.s32.totalorder %s1607_s10, %s1203_s22  ;;  %p1207_p6 = scmp.lt.u32.totalorder %s1203_s22, %s1607_s10 }
 0xb44   :  { %p1209_p7 = pnand %p1207_p6, %p1204_p5 }
 0xb46   :  { %1212 = shalt.err (!%p1209_p7)
}
 0xb47   :  { %849 = dma.vmem_to_hbm [thread:$0]  %s847_s6, 32, %s1607_s10, [#allocation6]  }
 0xb48   :  { %s1213_s0 = scalar_lea.vmem %s1554_s1, 256  ;;  %p1218_p9 = scmp.lt.s32.totalorder %s1554_s1, %s1554_s1 }
 0xb49   :  { %p1214_p8 = scmp.ne.s32.totalorder %s1554_s1, %s1213_s0  ;;  %p1219_p10 = scmp.lt.s32.totalorder %s1213_s0, %s1213_s0 }
 0xb4b   :  { %p1220_p11 = por %p1219_p10, %p1218_p9 }
 0xb4d   :  { %p1221_p12 = pnand %p1220_p11, %p1214_p8 }
 0xb4f   :  { %1224 = shalt.err (!%p1221_p12)
}
 0xb50   :  { %s1225_s29 = scalar_lea.hbm %s1606_s9, 256 }
 0xb51   :  { %p1226_p13 = scmp.ne.s32.totalorder %s1606_s9, %s1225_s29  ;;  %p1229_p0 = scmp.lt.u32.totalorder %s1225_s29, %s1606_s9 }
 0xb53   :  { %p1231_p1 = pnand %p1229_p0, %p1226_p13 }
 0xb55   :  { %1234 = shalt.err (!%p1231_p1)
}
 0xb56   :  { %s1266_s10 = smov 128   ;;  %s1267_s4 = smov 8  }
 0xb57   :  { %839 = dma.vmem_to_hbm [thread:$0]  %s1554_s1, 256, %s1606_s9, [#allocation4], %s1266_s10, %s1266_s10, %s1267_s4  }
 0xb58   :  { %s1268_s16 = smov [#allocation7]  }
 0xb59   :  { %s856_s17 = sshll.u32 %s1268_s16, 4  ;;  %s857_s17 = int_to_ptr.vmem [resolvable:$true] %s856_s17 }
 0xb5a   :  { %s1235_s18 = scalar_lea.vmem %s857_s17, 32  ;;  %p1240_p3 = scmp.lt.s32.totalorder %s857_s17, %s857_s17 }
 0xb5b   :  { %p1236_p2 = scmp.ne.s32.totalorder %s857_s17, %s1235_s18  ;;  %p1241_p4 = scmp.lt.s32.totalorder %s1235_s18, %s1235_s18 }
 0xb5d   :  { %p1242_p5 = por %p1241_p4, %p1240_p3 }
 0xb5f   :  { %p1243_p6 = pnand %p1242_p5, %p1236_p2 }
 0xbcc   :  { %v823_v8 = vpop.xlane.xlu1 %822 }
 0xbcd   :  { %1189 = vlog2.f32 %v823_v8 }
 0xbd7   :  { %v1190_v9 = vpop.eup %1189 }
 0xbd8   :  { %v825_v10 = vmul.f32 0.6931472, %v1190_v9 }
 0xbda   :  { %v826_v11 = vsub.f32 %v818_v4, %v825_v10 }
 0xbdc   :  { %827 = vst [vmem:[#allocation7] sm:$0x3] %v826_v11 }
 0xbdd   :  { %1246 = shalt.err (!%p1243_p6)
}
 0xbde   :  { %s1247_s9 = scalar_lea.hbm %s1608_s11, 32 }
 0xbdf   :  { %p1248_p7 = scmp.ne.s32.totalorder %s1608_s11, %s1247_s9  ;;  %p1251_p8 = scmp.lt.u32.totalorder %s1247_s9, %s1608_s11 }
 0xbe1   :  { %p1253_p9 = pnand %p1251_p8, %p1248_p7 }
 0xbe3   :  { %1256 = shalt.err (!%p1253_p9)
}
 0xbe4   :  { %859 = dma.vmem_to_hbm [thread:$0]  %s857_s17, 32, %s1608_s11, [#allocation6]  }
 0xbe5   :  { %1257 = dma.done.wait [#allocation4], 256  }
 0xbe6   :  { %1258 = vsyncadd [#allocation4], 4294967040 }
 0xbe7   :  { %1259 = dma.done.wait [#allocation6], 64  }
 0xbe8   :  { %1260 = vsyncadd [#allocation6], 4294967232 }
 0xbe9   :  { %869 = vsyncpa [#allocation4], 1 }
 0xbea   :  { %870 = vsyncpa [#allocation6], 1 }

</bundles_post_ra>
